<compile_context>
chip_gen: v7x
topology: tpu7x:2x2x1
jax: 0.10.0
libtpu: 0.0.40
codegen_flags: <defaults>
</compile_context>

<pallas_src>
import functools

import jax
import jax.numpy as jnp
from jax.experimental import pallas as pl
from jax.experimental.pallas import tpu as pltpu


NUM_FEATURES = 300   # self.num_features
HIDDEN_SIZE = 768    # self.hidden_size

_ROW_GRAN = 16       # row-tile granularity: sublane-safe for both f32 and bf16 blocks


def _round_up(x, m):
    return ((x + m - 1) // m) * m


# ----------------------------------------------------------------------------
# Pallas kernel: row-tiled dense layer  y = x @ W + b
# ----------------------------------------------------------------------------
def _linear_kernel(x_ref, w_ref, b_ref, o_ref, *, compute_dtype, precision):
    # x_ref: (tm, F_in) f32   w_ref: (F_in, tn) compute_dtype
    # b_ref: (1,  tn)  f32    o_ref: (tm, tn)  out_dtype
    x = x_ref[...].astype(compute_dtype)          # VPU cast, hidden under the input DMA
    acc = jnp.dot(x, w_ref[...], precision=precision,
                  preferred_element_type=jnp.float32)
    o_ref[...] = (acc + b_ref[...]).astype(o_ref.dtype)


def prepare_fc_hidden_params(weight, bias, compute_dtype=jnp.bfloat16):
    """Pre-cast the (frozen) Linear params once instead of on every forward call."""
    return weight.astype(compute_dtype), bias.reshape(1, -1).astype(jnp.float32)


def fc_hidden_pallas(node_feats, weight, bias, *, tm=512,
                     compute_dtype=jnp.bfloat16, out_dtype=None, precision=None):
    """Apply Linear(F_in -> F_out) to node_feats [B, N, F_in] via Pallas.

    weight: [F_in, F_out] (transpose of torch's [out, in]); bias: [F_out] or [1, F_out].
    Returns [B, N, F_out] in `out_dtype` (defaults to node_feats.dtype).
    """
    B, N, F_in = node_feats.shape
    F_out = weight.shape[1]
    if out_dtype is None:
        out_dtype = node_feats.dtype
    if precision is None:
        # Pass jax.lax.Precision.HIGHEST here if bit-level f32 parity is required.
        precision = jax.lax.Precision.DEFAULT
    M = B * N

    # Activations go in unpadded and uncast; the kernel casts and Mosaic lane-pads K.
    x2d = node_feats.reshape(M, F_in)

    # Params: cheap no-ops when already prepared via prepare_fc_hidden_params().
    w_c = weight.astype(compute_dtype)
    b2d = bias.reshape(1, F_out).astype(jnp.float32)   # bias add stays f32 on the VPU

    # Row tile: multiple of 16; shrink to one minimal tile for tiny M instead of padding.
    # No explicit M padding: grid rows = cdiv(M, tm), Pallas clips the partial last block.
    tm_eff = min(_round_up(tm, _ROW_GRAN), _round_up(M, _ROW_GRAN))
    row_tiles = pl.cdiv(M, tm_eff)

    # v7x has 2 TensorCores: with a single row tile, split F_out into two 384-wide
    # parallel tiles so both cores get work.  For larger M keep a single lane-dense
    # 768-wide output tile so x is read from HBM exactly once.
    n_tiles = 2 if row_tiles < 2 else 1
    tn = F_out // n_tiles

    kernel = functools.partial(_linear_kernel,
                               compute_dtype=compute_dtype, precision=precision)

    out2d = pl.pallas_call(
        kernel,
        out_shape=jax.ShapeDtypeStruct((M, F_out), out_dtype),
        grid_spec=pltpu.PrefetchScalarGridSpec(
            num_scalar_prefetch=0,
            grid=(row_tiles, n_tiles),
            in_specs=[
                pl.BlockSpec((tm_eff, F_in), lambda i, j: (i, 0)),  # row tile of raw f32 x
                pl.BlockSpec((F_in, tn), lambda i, j: (0, j)),      # resident weight tile
                pl.BlockSpec((1, tn), lambda i, j: (0, j)),         # resident bias row
            ],
            out_specs=pl.BlockSpec((tm_eff, tn), lambda i, j: (i, j)),
        ),
        compiler_params=pltpu.CompilerParams(
            dimension_semantics=("parallel", "parallel")),  # v7x: shard tiles across TCs
    )(x2d, w_c, b2d)

    return out2d.reshape(B, N, F_out)


# ----------------------------------------------------------------------------
# Deterministic parameter init (nn.Linear default: U(-1/sqrt(fan_in), +))
# ----------------------------------------------------------------------------
def init_fc_hidden(key, f_in=NUM_FEATURES, f_out=HIDDEN_SIZE, dtype=jnp.float32):
    kw, kb = jax.random.split(key)
    bound = 1.0 / jnp.sqrt(float(f_in))
    # stored as [F_in, F_out] (transpose of PyTorch's [out, in])
    weight = jax.random.uniform(kw, (f_in, f_out), dtype, -bound, bound)
    bias = jax.random.uniform(kb, (f_out,), dtype, -bound, bound)
    return weight, bias


# ----------------------------------------------------------------------------
# Stand-in for the frozen MoMu graph2d_encoder (plain JAX glue, not the kernel)
# ----------------------------------------------------------------------------
def synthetic_graph2d_encoder(key, batch=2, max_nodes=8, f=NUM_FEATURES,
                              dtype=jnp.float32):
    k1, _ = jax.random.split(key)
    node_feats = jax.random.normal(k1, (batch, max_nodes, f), dtype)
    node_feats_mask = jnp.ones((batch, max_nodes), dtype=jnp.bool_)
    graph_feats = jnp.mean(node_feats, axis=1)
    return graph_feats, node_feats, node_feats_mask


def graph_encoder_forward(node_feats, weight, bias, **kw):
    """GraphEncoder.forward: returns fc_hidden(node_feats)."""
    return fc_hidden_pallas(node_feats, weight, bias, **kw)


if __name__ == "__main__":
    key = jax.random.PRNGKey(0)
    k_enc, k_fc = jax.random.split(key)

    # Small shapes consistent with the module: batch=2, max_nodes=8, features=300.
    graph_feats, node_feats, node_feats_mask = synthetic_graph2d_encoder(
        k_enc, batch=2, max_nodes=8)

    weight, bias = init_fc_hidden(k_fc)

    # Reference (plain JAX, same math as torch.nn.Linear) in f32.
    ref = node_feats @ weight + bias

    # 1) f32-compute path (unpadded K, f32 params) -> tight tolerance.
    out_f32 = graph_encoder_forward(node_feats, weight, bias,
                                    compute_dtype=jnp.float32)
    out_f32 = jax.block_until_ready(out_f32)
    assert out_f32.shape == (2, 8, HIDDEN_SIZE), out_f32.shape
    assert jnp.allclose(out_f32, ref, atol=1e-4, rtol=1e-4), "f32-path mismatch"

    # 2) Performance path: frozen params pre-cast ONCE, bf16 MXU, f32 accumulation.
    w_bf16, b2d = prepare_fc_hidden_params(weight, bias, jnp.bfloat16)
    out = graph_encoder_forward(node_feats, w_bf16, b2d)
    out = jax.block_until_ready(out)
    assert out.shape == (2, 8, HIDDEN_SIZE), out.shape
    max_err = float(jnp.max(jnp.abs(out.astype(jnp.float32) - ref)))
    assert max_err < 5e-2, f"bf16-path mismatch, max_err={max_err}"

    # 3) bf16-output path (cuts the dominant f32 writeback stream on v6e/v7x).
    out_bf = graph_encoder_forward(node_feats, w_bf16, b2d, out_dtype=jnp.bfloat16)
    out_bf = jax.block_until_ready(out_bf)
    assert out_bf.dtype == jnp.bfloat16 and out_bf.shape == (2, 8, HIDDEN_SIZE)
    max_err_bf = float(jnp.max(jnp.abs(out_bf.astype(jnp.float32) - ref)))
    assert max_err_bf < 1e-1, f"bf16-out mismatch, max_err={max_err_bf}"

    print("KERNEL_OK")
</pallas_src>

<mosaic_0001>
module attributes {stable_mosaic.version = 11 : i64} {
  func.func @_linear_kernel(%arg0: i32, %arg1: i32, %arg2: memref<16x300xf32, #tpu.memory_space<vmem>>, %arg3: memref<300x384xf32, #tpu.memory_space<vmem>>, %arg4: memref<1x384xf32, #tpu.memory_space<vmem>>, %arg5: memref<16x384xf32, #tpu.memory_space<vmem>>) attributes {dimension_semantics = [#tpu.dimension_semantics<parallel>, #tpu.dimension_semantics<parallel>], iteration_bounds = array<i64: 1, 2>, scalar_prefetch = 0 : i64, scratch_operands = 0 : i64, tpu.core_type = #tpu.core_type<tc>, window_params = [{transform_indices = @transform_0, window_bounds = array<i64: 16, 300>}, {transform_indices = @transform_1, window_bounds = array<i64: 300, 384>}, {transform_indices = @transform_2, window_bounds = array<i64: 1, 384>}, {transform_indices = @transform_3, window_bounds = array<i64: 16, 384>}]} {
    %c0 = arith.constant 0 : index
    %c0_0 = arith.constant 0 : index
    %0 = vector.load %arg2[%c0, %c0_0] : memref<16x300xf32, #tpu.memory_space<vmem>>, vector<16x300xf32>
    %c0_1 = arith.constant 0 : index
    %c0_2 = arith.constant 0 : index
    %1 = vector.load %arg3[%c0_1, %c0_2] : memref<300x384xf32, #tpu.memory_space<vmem>>, vector<300x384xf32>
    %cst = arith.constant dense<0.000000e+00> : vector<16x384xf32>
    %2 = tpu.matmul %0, %1, %cst {dimension_numbers = #tpu.dot_dimension_numbers<[1], [0], [0], [1], [0, 0, 1, 1], [], []>} : vector<16x300xf32>, vector<300x384xf32>, vector<16x384xf32> -> vector<16x384xf32>
    %c0_3 = arith.constant 0 : index
    %c0_4 = arith.constant 0 : index
    %3 = vector.load %arg4[%c0_3, %c0_4] : memref<1x384xf32, #tpu.memory_space<vmem>>, vector<1x384xf32>
    %4 = vector.broadcast %3 : vector<1x384xf32> to vector<16x384xf32>
    %5 = arith.addf %2, %4 : vector<16x384xf32>
    %c0_5 = arith.constant 0 : index
    %c0_6 = arith.constant 0 : index
    %6 = vector.load %arg5[%c0_5, %c0_6] : memref<16x384xf32, #tpu.memory_space<vmem>>, vector<16x384xf32>
    tpu.vector_store %arg5[%c0_5, %c0_6], %5 {strides = array<i32>} : memref<16x384xf32, #tpu.memory_space<vmem>>, vector<16x384xf32>,
    return
  }
  func.func @transform_0(%arg0: i32, %arg1: i32) -> (i32, i32) {
    %c0_i32 = arith.constant 0 : i32
    %c0_i32_0 = arith.constant 0 : i32
    return %arg0, %c0_i32 : i32, i32
  }
  func.func @transform_1(%arg0: i32, %arg1: i32) -> (i32, i32) {
    %c0_i32 = arith.constant 0 : i32
    %c0_i32_0 = arith.constant 0 : i32
    return %c0_i32, %arg1 : i32, i32
  }
  func.func @transform_2(%arg0: i32, %arg1: i32) -> (i32, i32) {
    %c0_i32 = arith.constant 0 : i32
    %c0_i32_0 = arith.constant 0 : i32
    return %c0_i32, %arg1 : i32, i32
  }
  func.func @transform_3(%arg0: i32, %arg1: i32) -> (i32, i32) {
    %c0_i32 = arith.constant 0 : i32
    return %arg0, %arg1 : i32, i32
  }
}

</mosaic_0001>

<bundles_post_ra>
// kernel: tpu_custom_call.1
= control target key start
LH: loop header
LB: loop body
LE: loop exit
PB: predicated region body
PF: predicated region fallthrough
CT: control target
= control target key end

     0   :  { %8 = vsyncpa [#allocation3], 0  ;;  %s1693_s0 = inlined_call_operand.hbm [shape: f32[16,300], index: 0, kind: input, shape index: {}]   ;;  %s1694_s1 = inlined_call_operand.hbm [shape: f32[300,768], index: 1, kind: input, shape index: {}]   ;;  %s1695_s2 = inlined_call_operand.vmem [shape: f32[1,768], index: 2, kind: input, shape index: {}]   ;;  %s1696_s3 = inlined_call_operand.hbm [shape: f32[16,768], index: 3, kind: output, shape index: {}]  }
   0x1   :  { %9 = vsyncpa [#allocation6], 0 }
   0x2   :  { %11 = vsyncpa [#allocation6 + $0x1], 0 }
   0x3   :  { %12 = vsyncpa [#allocation4], 0 }
   0x4   :  { %14 = vsyncpa [#allocation4 + $0x1], 0  ;;  %s1312_s12 = smov 0   ;;  %s1314_s13 = smov 0  }
   0x5   :  { %s1316_s14 = smov 0   ;;  %s1318_s15 = smov 0  }
   0x6   :  { %s1320_s16 = smov 0   ;;  %s1322_s17 = smov 0  }
   0x7 LB: > { %s838_s18 = sadd.s32 4294967295, %s1279_s17   ;;  %s839_s19 = sadd.s32 4294967294, %s1279_s17   ;;  %s1279_s17 = sphi %s1322_s17, %s20_s17   ;;  %s1275_s16 = sphi %s1320_s16, %s1728_s16   ;;  %s1271_s15 = sphi %s1318_s15, %s1727_s15   ;;  %s1267_s14 = sphi %s1316_s14, %s1726_s14   ;;  %s1263_s13 = sphi %s1314_s13, %s1725_s13   ;;  %s1259_s12 = sphi %s1312_s12, %s1724_s12  }
   0x8   : > { %s65_s20 = sadd.s32 1, %s1267_s14  ;;  %p72_p0 = scmp.ne.s32.totalorder %s1267_s14, %s1263_s13 }
   0x9   : > { %p73_p1 = scmp.eq.s32.totalorder %s1279_s17, 0  ;;  %p78_p2 = scmp.ne.s32.totalorder %s1263_s13, %s1259_s12 }
   0xa   : > { %p1350_p3 = scmp.eq.s32.totalorder %s838_s18, 0  ;;  %p130_p4 = scmp.eq.s32.totalorder %s838_s18, 1 }
   0xb   : > { %p1354_p5 = por %p73_p1, %p72_p0  ;;  %p136_p6 = scmp.eq.s32.totalorder %s839_s19, 1 }
   0xc   : > { %s1704_s21 = scalar_select %p1350_p3, 1, 0 }
   0xd   : > { %p1360_p7 = por %p1350_p3, %p78_p2  ;;  %p1364_p8 = por %p130_p4, %p72_p0 }
   0xe   : > { %p1368_p9 = por %p136_p6, %p78_p2  ;;  %p840_p10 = scmp.ge.s32.totalorder %s1279_s17, 1 }
   0xf   : > { %s1706_s23 = scalar_select %p1360_p7, 1, 0 }
  0x10   : > { %s1707_s24 = scalar_select %p1364_p8, 1, 0 }
  0x11   : > { %s1708_s25 = scalar_select %p1368_p9, 1, 0 }
  0x12   : > { %p143_p11 = scmp.lt.s32.totalorder %s1279_s17, 3  ;;  %s1281_s27 = smov [#allocation2]  }
  0x13   : > { %s159_s28 = sshll.u32 %s1281_s27, 4  ;;  %p1075_p1 = scmp.lt.s32.totalorder %s1279_s17, 2  ;;  %s1378_s28 = int_to_ptr.vmem [resolvable:$true] %s159_s28 }
  0x14   : > { %p1374_p12 = pnand %p840_p10, %p143_p11  ;;  %s29_s4 = sadd.s32 1, %s1275_s16 }
  0x15   : > { %p1392_p4 = pnand %p1075_p1, %p1354_p5  ;;  %p1397_p6 = scmp.ge.s32.totalorder %s29_s4, 2 }
  0x16   : > { %s1709_s26 = scalar_select %p1374_p12, 1, 0 }
  0x17   : > { %p1062_p13 = pneg %p1374_p12  ;;  %s1135_s8 = scalar_lea.hbm %s1693_s0, 768 }
  0x18   : > { %s1711_s30 = scalar_select %p1392_p4, 1, 0 }
  0x19   : > { %p1386_p2 = pnand %p1062_p13, %p1350_p3  ;;  %p1136_p10 = scmp.ne.s32.totalorder %s1693_s0, %s1135_s8 }
  0x1a   : > { %s1712_s5 = scalar_select %p1397_p6, 1, 0 }
  0x1b   : > { %p1137_p11 = pneg %p1386_p2  ;;  %p1142_p1 = scmp.lt.u32.totalorder %s1135_s8, %s1693_s0 }
  0x1d   : > { %p1138_p13 = pnand %p1137_p11, %p1136_p10 }
  0x1f   : > { %p1139_p5 = pneg %p1138_p13 }
  0x21   : > { %p1144_p0 = pnand %p1142_p1, %p1139_p5 }
  0x23   : > { %1147 = shalt.err (!%p1144_p0)
}
  0x24   : > { %s1148_s19 = scalar_lea.vmem %s1378_s28, 768  ;;  %p1156_p3 = scmp.lt.s32.totalorder %s1378_s28, %s1378_s28 }
  0x25   : > { %p1149_p9 = scmp.ne.s32.totalorder %s1378_s28, %s1148_s19  ;;  %p1157_p12 = scmp.lt.s32.totalorder %s1148_s19, %s1148_s19 }
  0x27   : > { %p1151_p8 = pnand %p1149_p9, %p1137_p11  ;;  %p1158_p4 = por %p1157_p12, %p1156_p3 }
  0x29   : > { %p1152_p7 = pneg %p1151_p8 }
  0x2b   : > { %p1159_p6 = pnand %p1158_p4, %p1152_p7 }
  0x2d   : > { %1162 = shalt.err (!%p1159_p6)
}
  0x2e   : > { %s1703_s22 = smov 384   ;;  %s1283_s27 = smov 24  }
  0x2f   : > { %1065 = dma.hbm_to_vmem [thread:$0]  (!%p1386_p2), %s1693_s0, 768, %s1378_s28, [#allocation3], %s1703_s22, %s1703_s22, %s1283_s27  }
  0x30   : > { %s173_s8 = sand.u32 1, %s1267_s14   ;;  %p1713_p3 = scmp.ne.s32.totalorder %s1712_s5, 0 }
  0x31   : > { %s1051_s9 = smul.u32 912, %s173_s8  ;;  %s1445_s7 = scalar_lea.sflag [#allocation6], %s173_s8 }
  0x32   : > { %s1730_s4 = smov (%p1713_p3, %s29_s4), 0  ;;  %s856_s11 = smul.u32 384, %s1275_s16 }
  0x33   : > { %s62_s10 = ssub.s32 %s1275_s16, %s1730_s4  ;;  %s177_s28 = scalar_lea.vmem [#allocation5], %s1051_s9 }
  0x34   : > { %p63_p7 = scmp.eq.s32.totalorder %s62_s10, 0  ;;  %s1436_s19 = scalar_lea.hbm %s1694_s1, %s856_s11 }
  0x35   : > { %s184_s6 = sshll.u32 %s177_s28, 4  ;;  %s1163_s22 = scalar_lea.hbm %s1436_s19, 14592  ;;  %s1443_s6 = int_to_ptr.vmem [resolvable:$true] %s184_s6 }
  0x36   : > { %s1441_s5 = scalar_select %p63_p7, %s1267_s14, %s65_s20  }
  0x37   : > { %p1164_p8 = scmp.ne.s32.totalorder %s1436_s19, %s1163_s22  ;;  %p1714_p9 = scmp.ne.s32.totalorder %s1711_s30, 0 }
  0x38   : > { %s1168_s9 = scalar_lea.hbm %s1694_s1, 29184  ;;  %p1169_p4 = scmp.lt.u32.totalorder %s1436_s19, %s1694_s1 }
  0x39   : > { %p1165_p12 = pneg %p1714_p9  ;;  %p1170_p6 = scmp.lt.u32.totalorder %s1168_s9, %s1163_s22 }
  0x3a   : > { %p1172_p11 = scmp.lt.u32.totalorder %s1163_s22, %s1436_s19 }
  0x3b   : > { %p1166_p0 = pnand %p1165_p12, %p1164_p8  ;;  %p1171_p10 = por %p1170_p6, %p1169_p4 }
  0x3d   : > { %p1167_p2 = pneg %p1166_p0  ;;  %p1173_p13 = por %p1172_p11, %p1171_p10 }
  0x3f   : > { %p1174_p5 = pnand %p1173_p13, %p1167_p2 }
  0x41   : > { %1177 = shalt.err (!%p1174_p5)
}
  0x42   : > { %s1178_s20 = scalar_lea.vmem %s1443_s6, 14592  ;;  %s1284_s8 = smov [#allocation5]  }
  0x43   : > { %p1179_p1 = scmp.ne.s32.totalorder %s1443_s6, %s1178_s20  ;;  %s1183_s28 = sshll.u32 %s1284_s8, 4  ;;  %s1184_s28 = int_to_ptr.vmem [resolvable:$false] %s1183_s28 }
  0x44   : > { %s1185_s10 = scalar_lea.vmem %s1184_s28, 29184  ;;  %p1186_p8 = scmp.lt.s32.totalorder %s1443_s6, %s1184_s28 }
  0x45   : > { %p1181_p3 = pnand %p1179_p1, %p1165_p12  ;;  %p1187_p0 = scmp.lt.s32.totalorder %s1185_s10, %s1178_s20 }
  0x47   : > { %p1182_p7 = pneg %p1181_p3  ;;  %p1188_p4 = por %p1187_p0, %p1186_p8 }
  0x49   : > { %p1189_p6 = pnand %p1188_p4, %p1182_p7 }
  0x4b   : > { %1192 = shalt.err (!%p1189_p6)
}
  0x4c   : > { %s1285_s22 = smov 768   ;;  %s1715_s11 = smov 384  }
  0x4d   : > { %1069 = dma.hbm_to_vmem [thread:$0]  (!%p1714_p9), %s1436_s19, 14592, %s1443_s6, %s1445_s7, %s1285_s22, %s1715_s11, %s1283_s27  }
  0x4e   : > { %p1716_p12 = scmp.ne.s32.totalorder %s1709_s26, 0 }
  0x4f   : > { %p1717_p2 = scmp.ne.s32.totalorder (!%p1716_p12), %s1704_s21, 0 }
  0x50   : > { %204 = sbr.rel (%p1716_p12) target bundleno = 397 (0x18d), region = 32 }
  0x57   : > { %1246 = dma.done.wait (%p1717_p2), [#allocation3], 768  }
  0x58   : > { %1248 = vsyncadd (%p1717_p2), [#allocation3], 4294966528  ;;  %s1482_s9 = sand.u32 1, %s1263_s13   ;;  %p1718_p9 = scmp.ne.s32.totalorder %s1706_s23, 0 }
  0x59   : > { %s1052_s30 = smul.u32 912, %s1482_s9  ;;  %s211_s18 = scalar_lea.sflag [#allocation6], %s1482_s9 }
  0x5b   : > { %s1486_s29 = scalar_lea.vmem [#allocation5], %s1052_s30 }
  0x5c   : > { %1250 = dma.done.wait (%p1718_p9), %s211_s18, 14592  }
  0x5d   : > { %1252 = vsyncadd (%p1718_p9), %s211_s18, 4294952704  ;;  %v1286_v0 = vmov 0.0   ;;  %v257_v1 = vld [vmem:[%s1486_s29 + $0x8] sm:$0xff]  ;;  %v260_v2 = vld [vmem:[%s1486_s29 + $0x20] sm:$0xff]  ;;  %vm394_vm0 = vcmask 1043456   ;;  %vm1287_vm1 = vmmov 1  }
  0x5e   : > { %545 = vmatprep.mubr.f32.mxu1 %v1286_v0  ;;  %v256_v3 = vld [vmem:[%s1486_s29] sm:$0xff]  ;;  %v919_v4 = vpack.c.bf16 %v260_v2, %v257_v1  ;;  %v259_v5 = vld [vmem:[%s1486_s29 + $0x18] sm:$0xff]  ;;  %v266_v7 = vld [vmem:[%s1486_s29 + $0x50] sm:$0xff]  ;;  %vm387_vm3 = vcmask 359424   ;;  %s243_s21 = smul.u32 3, %s1271_s15  ;;  %p1721_p13 = scmp.ne.s32.totalorder %s1707_s24, 0 }
  0x5f   : > { %v263_v6 = vld [vmem:[%s1486_s29 + $0x38] sm:$0xff]  ;;  %v921_v8 = vpack.c.bf16 %v259_v5, %v256_v3  ;;  %v262_v10 = vld [vmem:[%s1486_s29 + $0x30] sm:$0xff]  ;;  %v265_v11 = vld [vmem:[%s1486_s29 + $0x48] sm:$0xff]  ;;  %s1053_s19 = smul.u32 48, %s1482_s9  ;;  %s1288_s11 = smov [#allocation7]  }
  0x60   : > { %v923_v9 = vpack.c.bf16 %v266_v7, %v263_v6  ;;  %v353_v12 = vld [vmem:[%s1486_s29 + $0x308] sm:$0xff]  ;;  %920 = vmatprep.subr.bf16.mxu0 %v919_v4  ;;  %v356_v13 = vld [vmem:[%s1486_s29 + $0x320] sm:$0xff]  ;;  %v355_v15 = vld [vmem:[%s1486_s29 + $0x318] sm:$0xff]  ;;  %v925_v16 = vpack.c.bf16 %v265_v11, %v262_v10  ;;  %p244_p10 = scmp.lt.s32.totalorder %s243_s21, 5  ;;  %s857_s20 = smul.u32 384, %s1271_s15 }
  0x61   : > { %v352_v14 = vld [vmem:[%s1486_s29 + $0x300] sm:$0xff]  ;;  %922 = vmatpush1.bf16.msra.mxu0 %v921_v8  ;;  %v983_v17 = vpack.c.bf16 %v356_v13, %v353_v12  ;;  %v269_v19 = vld [vmem:[%s1486_s29 + $0x68] sm:$0xff]  ;;  %v271_v23 = vld [vmem:[%s1486_s29 + $0x78] sm:$0xff]  ;;  %s240_s6 = scalar_lea.vmem [#allocation7], %s1053_s19  ;;  %s715_s15 = scalar_lea.sflag [#allocation4], %s1482_s9 }
  0x62   : > { %v985_v18 = vpack.c.bf16 %v355_v15, %v352_v14  ;;  %v272_v20 = vld [vmem:[%s1486_s29 + $0x80] sm:$0xff]  ;;  %924 = vmatprep.subr.bf16.mxu0 %v923_v9  ;;  %v359_v24 = vld [vmem:[%s1486_s29 + $0x338] sm:$0xff]  ;;  %v362_v25 = vld [vmem:[%s1486_s29 + $0x350] sm:$0xff]  ;;  %s1732_s21 = smov (!%p244_p10, %s243_s21), 5  ;;  %s731_s7 = sshll.u32 %s240_s6, 4  ;;  %s1639_s7 = int_to_ptr.vmem [resolvable:$true] %s731_s7 }
  0x63   : > { %v268_v21 = vld [vmem:[%s1486_s29 + $0x60] sm:$0xff]  ;;  %v927_v22 = vpack.c.bf16 %v272_v20, %v269_v19  ;;  %984 = vmatprep.subr.bf16.mxu1 %v983_v17  ;;  %v987_v26 = vpack.c.bf16 %v362_v25, %v359_v24  ;;  %v358_v27 = vld [vmem:[%s1486_s29 + $0x330] sm:$0xff]  ;;  %v361_v28 = vld [vmem:[%s1486_s29 + $0x348] sm:$0xff]  ;;  %s246_s27 = scalar_lea.vmem %s1695_s2, %s1732_s21  ;;  %s1644_s10 = scalar_lea.hbm %s1696_s3, %s857_s20 }
  0x64   : > { %v275_v29 = vld [vmem:[%s1486_s29 + $0x98] sm:$0xff]  ;;  %986 = vmatpush1.bf16.msra.mxu1 %v985_v18  ;;  %v989_v30 = vpack.c.bf16 %v361_v28, %v358_v27  ;;  %v278_v31 = vld [vmem:[%s1486_s29 + $0xb0] sm:$0xff]  ;;  %vm1516_vm2 = vmpackc.low %vm394_vm0, %vm1287_vm1  ;;  %v929_v33 = vpack.c.bf16 %v271_v23, %v268_v21  ;;  %s1193_s22 = scalar_lea.vmem %s1639_s7, 768  ;;  %s1197_s30 = sshll.u32 %s1288_s11, 4  ;;  %s1198_s30 = int_to_ptr.vmem [resolvable:$false] %s1197_s30 }
  0x65   : > { %926 = vmatpush1.bf16.msra.mxu0 %v925_v16  ;;  %988 = vmatprep.subr.bf16.mxu1 %v987_v26  ;;  %v365_v34 = vld [vmem:[%s1486_s29 + $0x368] sm:$0xff]  ;;  %v368_v35 = vld [vmem:[%s1486_s29 + $0x380] sm:$0xf]  ;;  %v931_v37 = vpack.c.bf16 %v278_v31, %v275_v29  ;;  %v274_v38 = vld [vmem:[%s1486_s29 + $0x90] sm:$0xff]  ;;  %p1194_p11 = scmp.ne.s32.totalorder %s1639_s7, %s1193_s22  ;;  %s1199_s18 = scalar_lea.vmem %s1198_s30, 1536 }
  0x66   : > { %v364_v36 = vld [vmem:[%s1486_s29 + $0x360] sm:$0xff]  ;;  %928 = vmatprep.subr.bf16.mxu0 %v927_v22  ;;  %v277_v39 = vld [vmem:[%s1486_s29 + $0xa8] sm:$0xff]  ;;  %v991_v40 = vpack.c.bf16 %v368_v35, %v365_v34  ;;  %v367_v41 = vld [vmem:[%s1486_s29 + $0x378] sm:$0xf]  ;;  %p1200_p3 = scmp.lt.s32.totalorder %s1639_s7, %s1198_s30  ;;  %p1201_p7 = scmp.lt.s32.totalorder %s1199_s18, %s1193_s22 }
  0x67   : > { %v281_v42 = vld [vmem:[%s1486_s29 + $0xc8] sm:$0xff]  ;;  %v284_v43 = vld [vmem:[%s1486_s29 + $0xe0] sm:$0xff]  ;;  %v306_v44 = vld [vmem:[%s1486_s29 + $0x190] sm:$0xff]  ;;  %v994_v45 = vpack.c.bf16 %v367_v41, %v364_v36  ;;  %v933_v47 = vpack.c.bf16 %v277_v39, %v274_v38  ;;  %p1195_p5 = pnand %p1194_p11, %p1721_p13 }
  0x68   : > { %990 = vmatpush1.bf16.msra.mxu1 %v989_v30  ;;  %v309_v46 = vld [vmem:[%s1486_s29 + $0x1a8] sm:$0xff]  ;;  %v258_v49 = vld [vmem:[%s1486_s29 + $0x10] sm:$0xff]  ;;  %v935_v51 = vpack.c.bf16 %v284_v43, %v281_v42  ;;  %v280_v52 = vld [vmem:[%s1486_s29 + $0xc0] sm:$0xff]  ;;  %p1202_p8 = por %p1201_p7, %p1200_p3 }
  0x69   : > { %930 = vmatpush1.bf16.msra.mxu0 %v929_v33  ;;  %993 = vmatprep.subr.msk.bf16.mxu1 %vm1516_vm2, %v991_v40  ;;  %v997_v48 = vpack.c.bf16 %v309_v46, %v306_v44  ;;  %v261_v50 = vld [vmem:[%s1486_s29 + $0x28] sm:$0xff]  ;;  %v283_v53 = vld [vmem:[%s1486_s29 + $0xd8] sm:$0xff]  ;;  %v312_v54 = vld [vmem:[%s1486_s29 + $0x1c0] sm:$0xff]  ;;  %p1196_p1 = pneg %p1195_p5 }
  0x6a   : > { %932 = vmatprep.subr.bf16.mxu0 %v931_v37  ;;  %v287_v55 = vld [vmem:[%s1486_s29 + $0xf8] sm:$0xff]  ;;  %v290_v56 = vld [vmem:[%s1486_s29 + $0x110] sm:$0xff]  ;;  %v999_v59 = vpack.c.bf16 %v261_v50, %v258_v49  ;;  %v937_v60 = vpack.c.bf16 %v283_v53, %v280_v52  ;;  %v264_v63 = vld [vmem:[%s1486_s29 + $0x40] sm:$0xff] }
  0x6b   : > { %v315_v57 = vld [vmem:[%s1486_s29 + $0x1d8] sm:$0xff]  ;;  %v1542_v58 = vld [vmem:[#allocation2 + $0x10] sm:$0xff]  ;;  %v939_v2 = vpack.c.bf16 %v290_v56, %v287_v55  ;;  %v289_v3 = vld [vmem:[%s1486_s29 + $0x108] sm:$0xff]  ;;  %p1203_p0 = pnand %p1202_p8, %p1196_p1 }
  0x6c   : > { %996 = vmatpush1.bf16.msk.msra.mxu1 %vm1516_vm2, %v994_v45  ;;  %v286_v61 = vld [vmem:[%s1486_s29 + $0xf0] sm:$0xff]  ;;  %v1001_v62 = vpack.c.bf16 %v315_v57, %v312_v54  ;;  %v267_v1 = vld [vmem:[%s1486_s29 + $0x58] sm:$0xff]  ;;  %v321_v5 = vld [vmem:[%s1486_s29 + $0x208] sm:$0xff] }
  0x6d   : > { %934 = vmatpush1.bf16.msra.mxu0 %v933_v47  ;;  %998 = vmatprep.subr.bf16.mxu1 %v997_v48  ;;  %v318_v4 = vld [vmem:[%s1486_s29 + $0x1f0] sm:$0xff]  ;;  %v293_v6 = vld [vmem:[%s1486_s29 + $0x128] sm:$0xff]  ;;  %v296_v7 = vld [vmem:[%s1486_s29 + $0x140] sm:$0xff]  ;;  %v1003_v8 = vpack.c.bf16 %v267_v1, %v264_v63  ;;  %v941_v9 = vpack.c.bf16 %v289_v3, %v286_v61 }
  0x6e   : > { %936 = vmatprep.subr.bf16.mxu0 %v935_v51  ;;  %v292_v10 = vld [vmem:[%s1486_s29 + $0x120] sm:$0xff]  ;;  %v1005_v11 = vpack.c.bf16 %v321_v5, %v318_v4  ;;  %v270_v12 = vld [vmem:[%s1486_s29 + $0x70] sm:$0xff]  ;;  %v273_v13 = vld [vmem:[%s1486_s29 + $0x88] sm:$0xff]  ;;  %v943_v14 = vpack.c.bf16 %v296_v7, %v293_v6 }
  0x6f   : > { %848 = vmatmul.mubr.msk.f32.vlgmr.msra.gmra.mrb[0].mxu1 %vm387_vm3, %v1542_v58  ;;  %v295_v15 = vld [vmem:[%s1486_s29 + $0x138] sm:$0xff]  ;;  %v324_v16 = vld [vmem:[%s1486_s29 + $0x220] sm:$0xff]  ;;  %v1007_v19 = vpack.c.bf16 %v273_v13, %v270_v12  ;;  %v298_v21 = vld [vmem:[%s1486_s29 + $0x150] sm:$0xff] }
  0x70   : > { %1000 = vmatpush3.bf16.msra.mxu1 %v999_v59  ;;  %551 = vmatprep.mubr.f32.mxu1 %v1286_v0  ;;  %v327_v17 = vld [vmem:[%s1486_s29 + $0x238] sm:$0xff]  ;;  %v302_v0 = vld [vmem:[%s1486_s29 + $0x170] sm:$0xff]  ;;  %v945_v20 = vpack.c.bf16 %v295_v15, %v292_v10  ;;  %v276_v23 = vld [vmem:[%s1486_s29 + $0xa0] sm:$0xff] }
  0x71   : > { %938 = vmatpush1.bf16.msra.mxu0 %v937_v60  ;;  %1002 = vmatprep.subr.bf16.mxu1 %v1001_v62  ;;  %v299_v18 = vld [vmem:[%s1486_s29 + $0x158] sm:$0xff]  ;;  %v1009_v22 = vpack.c.bf16 %v327_v17, %v324_v16  ;;  %v301_v26 = vld [vmem:[%s1486_s29 + $0x168] sm:$0xff]  ;;  %v330_v27 = vld [vmem:[%s1486_s29 + $0x250] sm:$0xff] }
  0x72   : > { %940 = vmatprep.subr.bf16.mxu0 %v939_v2  ;;  %v279_v24 = vld [vmem:[%s1486_s29 + $0xb8] sm:$0xff]  ;;  %v947_v25 = vpack.c.bf16 %v302_v0, %v299_v18  ;;  %v333_v28 = vld [vmem:[%s1486_s29 + $0x268] sm:$0xff]  ;;  %v308_v30 = vld [vmem:[%s1486_s29 + $0x1a0] sm:$0xff]  ;;  %v949_v33 = vpack.c.bf16 %v301_v26, %v298_v21 }
  0x73   : > { %v305_v29 = vld [vmem:[%s1486_s29 + $0x188] sm:$0xff]  ;;  %v1011_v31 = vpack.c.bf16 %v279_v24, %v276_v23  ;;  %v304_v34 = vld [vmem:[%s1486_s29 + $0x180] sm:$0xff]  ;;  %v1013_v35 = vpack.c.bf16 %v333_v28, %v330_v27  ;;  %v282_v36 = vld [vmem:[%s1486_s29 + $0xd0] sm:$0xff] }
  0x74   : > { %1004 = vmatpush3.bf16.msra.mxu1 %v1003_v8  ;;  %v285_v37 = vld [vmem:[%s1486_s29 + $0xe8] sm:$0xff]  ;;  %v951_v38 = vpack.c.bf16 %v308_v30, %v305_v29  ;;  %v307_v39 = vld [vmem:[%s1486_s29 + $0x198] sm:$0xff]  ;;  %v336_v40 = vld [vmem:[%s1486_s29 + $0x280] sm:$0xff] }
  0x75   : > { %942 = vmatpush1.bf16.msra.mxu0 %v941_v9  ;;  %1006 = vmatprep.subr.bf16.mxu1 %v1005_v11  ;;  %v339_v41 = vld [vmem:[%s1486_s29 + $0x298] sm:$0xff]  ;;  %v314_v43 = vld [vmem:[%s1486_s29 + $0x1d0] sm:$0xff]  ;;  %v1015_v45 = vpack.c.bf16 %v285_v37, %v282_v36  ;;  %v953_v47 = vpack.c.bf16 %v307_v39, %v304_v34  ;;  %v288_v49 = vld [vmem:[%s1486_s29 + $0x100] sm:$0xff] }
  0x76   : > { %944 = vmatprep.subr.bf16.mxu0 %v943_v14  ;;  %v311_v42 = vld [vmem:[%s1486_s29 + $0x1b8] sm:$0xff]  ;;  %v310_v46 = vld [vmem:[%s1486_s29 + $0x1b0] sm:$0xff]  ;;  %v1017_v48 = vpack.c.bf16 %v339_v41, %v336_v40  ;;  %v313_v53 = vld [vmem:[%s1486_s29 + $0x1c8] sm:$0xff] }
  0x77   : > { %v1579_v44 = vld [vmem:[#allocation2 + $0x28] sm:$0xff]  ;;  %v955_v52 = vpack.c.bf16 %v314_v43, %v311_v42  ;;  %v342_v54 = vld [vmem:[%s1486_s29 + $0x2b0] sm:$0xff]  ;;  %v320_v57 = vld [vmem:[%s1486_s29 + $0x200] sm:$0xff]  ;;  %v957_v60 = vpack.c.bf16 %v313_v53, %v310_v46 }
  0x78   : > { %1008 = vmatpush3.bf16.msra.mxu1 %v1007_v19  ;;  %v291_v50 = vld [vmem:[%s1486_s29 + $0x118] sm:$0xff]  ;;  %v345_v55 = vld [vmem:[%s1486_s29 + $0x2c8] sm:$0xff]  ;;  %v316_v61 = vld [vmem:[%s1486_s29 + $0x1e0] sm:$0xff] }
  0x79   : > { %946 = vmatpush1.bf16.msra.mxu0 %v945_v20  ;;  %1010 = vmatprep.subr.bf16.mxu1 %v1009_v22  ;;  %v251_v51 = vld [vmem:[#allocation2 + $0x8] sm:$0xff]  ;;  %v1019_v59 = vpack.c.bf16 %v291_v50, %v288_v49  ;;  %v1021_v62 = vpack.c.bf16 %v345_v55, %v342_v54  ;;  %v294_v63 = vld [vmem:[%s1486_s29 + $0x130] sm:$0xff]  ;;  %v348_v4 = vld [vmem:[%s1486_s29 + $0x2e0] sm:$0xff] }
  0x7a   : > { %948 = vmatprep.subr.bf16.mxu0 %v947_v25  ;;  %849 = vmatmul.mubr.msk.f32.gmra.mrb[2].mxu1 %vm387_vm3, %v1579_v44  ;;  %v317_v56 = vld [vmem:[%s1486_s29 + $0x1e8] sm:$0xff]  ;;  %v319_v3 = vld [vmem:[%s1486_s29 + $0x1f8] sm:$0xff]  ;;  %v326_v7 = vld [vmem:[%s1486_s29 + $0x230] sm:$0xff] }
  0x7b   : > { %622 = vmatprep.mubr.f32.mxu1 %v251_v51  ;;  %468 = vmatprep.mubr.f32.mxu0 %v251_v51  ;;  %v297_v1 = vld [vmem:[%s1486_s29 + $0x148] sm:$0xff]  ;;  %v959_v2 = vpack.c.bf16 %v320_v57, %v317_v56  ;;  %v351_v5 = vld [vmem:[%s1486_s29 + $0x2f8] sm:$0xff]  ;;  %v961_v9 = vpack.c.bf16 %v319_v3, %v316_v61  ;;  %v322_v10 = vld [vmem:[%s1486_s29 + $0x210] sm:$0xff] }
  0x7c   : > { %1012 = vmatpush3.bf16.msra.mxu1 %v1011_v31  ;;  %v323_v6 = vld [vmem:[%s1486_s29 + $0x218] sm:$0xff]  ;;  %v1023_v8 = vpack.c.bf16 %v297_v1, %v294_v63  ;;  %v1025_v11 = vpack.c.bf16 %v351_v5, %v348_v4  ;;  %v300_v12 = vld [vmem:[%s1486_s29 + $0x160] sm:$0xff]  ;;  %v325_v15 = vld [vmem:[%s1486_s29 + $0x228] sm:$0xff] }
  0x7d   : > { %950 = vmatpush1.bf16.msra.mxu0 %v949_v33  ;;  %1014 = vmatprep.subr.bf16.mxu1 %v1013_v35  ;;  %v303_v13 = vld [vmem:[%s1486_s29 + $0x178] sm:$0xff]  ;;  %v963_v14 = vpack.c.bf16 %v326_v7, %v323_v6  ;;  %v354_v16 = vld [vmem:[%s1486_s29 + $0x310] sm:$0xff]  ;;  %v357_v17 = vld [vmem:[%s1486_s29 + $0x328] sm:$0xff]  ;;  %v965_v20 = vpack.c.bf16 %v325_v15, %v322_v10 }
  0x7e   : > { %952 = vmatprep.subr.bf16.mxu0 %v951_v38  ;;  %v329_v18 = vld [vmem:[%s1486_s29 + $0x248] sm:$0xff]  ;;  %v332_v0 = vld [vmem:[%s1486_s29 + $0x260] sm:$0xff]  ;;  %v1027_v19 = vpack.c.bf16 %v303_v13, %v300_v12  ;;  %v1029_v22 = vpack.c.bf16 %v357_v17, %v354_v16  ;;  %v331_v24 = vld [vmem:[%s1486_s29 + $0x258] sm:$0xff] }
  0x7f   : > { %v328_v21 = vld [vmem:[%s1486_s29 + $0x240] sm:$0xff]  ;;  %v967_v23 = vpack.c.bf16 %v332_v0, %v329_v18  ;;  %v363_v26 = vld [vmem:[%s1486_s29 + $0x358] sm:$0xff]  ;;  %v338_v28 = vld [vmem:[%s1486_s29 + $0x290] sm:$0xff] }
  0x80   : > { %1016 = vmatpush3.bf16.msra.mxu1 %v1015_v45  ;;  %v360_v25 = vld [vmem:[%s1486_s29 + $0x340] sm:$0xff]  ;;  %v335_v27 = vld [vmem:[%s1486_s29 + $0x278] sm:$0xff]  ;;  %v969_v30 = vpack.c.bf16 %v331_v24, %v328_v21  ;;  %v334_v31 = vld [vmem:[%s1486_s29 + $0x270] sm:$0xff] }
  0x81   : > { %954 = vmatpush1.bf16.msra.mxu0 %v953_v47  ;;  %1018 = vmatprep.subr.bf16.mxu1 %v1017_v48  ;;  %v250_v29 = vld [vmem:[#allocation2] sm:$0xff]  ;;  %v1033_v33 = vpack.c.bf16 %v363_v26, %v360_v25  ;;  %v971_v35 = vpack.c.bf16 %v338_v28, %v335_v27  ;;  %v337_v36 = vld [vmem:[%s1486_s29 + $0x288] sm:$0xff]  ;;  %v343_v47 = vld [vmem:[%s1486_s29 + $0x2b8] sm:$0xff] }
  0x82   : > { %956 = vmatprep.subr.bf16.mxu0 %v955_v52  ;;  %v254_v34 = vld [vmem:[#allocation2 + $0x20] sm:$0xff]  ;;  %v369_v38 = vld [vmem:[%s1486_s29 + $0x388] sm:$0xf]  ;;  %v973_v42 = vpack.c.bf16 %v337_v36, %v334_v31  ;;  %v347_v48 = vld [vmem:[%s1486_s29 + $0x2d8] sm:$0xff] }
  0x83   : > { %v366_v37 = vld [vmem:[%s1486_s29 + $0x370] sm:$0xff]  ;;  %v341_v39 = vld [vmem:[%s1486_s29 + $0x2a8] sm:$0xff]  ;;  %v344_v40 = vld [vmem:[%s1486_s29 + $0x2c0] sm:$0xff] }
  0x84   : > { %1020 = vmatpush3.bf16.msra.mxu1 %v1019_v59  ;;  %v253_v41 = vld [vmem:[#allocation2 + $0x18] sm:$0xff]  ;;  %v1037_v43 = vpack.c.bf16 %v369_v38, %v366_v37  ;;  %v975_v45 = vpack.c.bf16 %v344_v40, %v341_v39  ;;  %v340_v46 = vld [vmem:[%s1486_s29 + $0x2a0] sm:$0xff]  ;;  %v350_v49 = vld [vmem:[%s1486_s29 + $0x2f0] sm:$0xff]  ;;  %v372_v59 = vlaneseq }
  0x85   : > { %958 = vmatpush1.bf16.msra.mxu0 %v957_v60  ;;  %1022 = vmatprep.subr.bf16.mxu1 %v1021_v62  ;;  %v977_v50 = vpack.c.bf16 %v343_v47, %v340_v46  ;;  %v979_v51 = vpack.c.bf16 %v350_v49, %v347_v48  ;;  %v346_v52 = vld [vmem:[%s1486_s29 + $0x2d0] sm:$0xff]  ;;  %v349_v53 = vld [vmem:[%s1486_s29 + $0x2e8] sm:$0xff] }
  0x86   : > { %960 = vmatprep.subr.bf16.mxu0 %v959_v2  ;;  %v981_v54 = vpack.c.bf16 %v349_v53, %v346_v52  ;;  %v373_v32 = vshrl.u32 %v372_v59, 7  ;;  %v370_v63 = vld [vmem:[%s246_s27] sm:$0x7] }
  0x88   : > { %1024 = vmatpush3.bf16.msra.mxu1 %v1023_v8  ;;  %v382_v62 = vsub.s32 2, %v373_v32  ;;  %v374_v7 = vsub.s32 0, %v373_v32  ;;  %v378_v8 = vsub.s32 1, %v373_v32 }
  0x89   : > { %962 = vmatpush1.bf16.msra.mxu0 %v961_v9  ;;  %1026 = vmatprep.subr.bf16.mxu1 %v1025_v11 }
  0x8a   : > { %964 = vmatprep.subr.bf16.mxu0 %v963_v14  ;;  %v383_v4 = vrot.slane %v370_v63, %v382_v62  ;;  %v375_v13 = vrot.slane %v370_v63, %v374_v7  ;;  %v379_v14 = vrot.slane %v370_v63, %v378_v8 }
  0x8c   : > { %1028 = vmatpush3.bf16.msra.mxu1 %v1027_v19 }
  0x8d   : > { %966 = vmatpush1.bf16.msra.mxu0 %v965_v20  ;;  %1030 = vmatprep.subr.bf16.mxu1 %v1029_v22 }
  0x8e   : > { %968 = vmatprep.subr.bf16.mxu0 %v967_v23 }
  0x8f   : > { %623 = vmatmul.mubr.f32.vlgmr.msra.gmra.mrb[4].mxu1 %v250_v29 }
  0x90   : > { %1032 = vmatpush3.bf16.msra.mxu1 %v1029_v22  ;;  %627 = vmatprep.mubr.f32.mxu1 %v254_v34 }
  0x91   : > { %970 = vmatpush1.bf16.msra.mxu0 %v969_v30  ;;  %1034 = vmatprep.subr.bf16.mxu1 %v1033_v33 }
  0x92   : > { %972 = vmatprep.subr.bf16.mxu0 %v971_v35 }
  0x93   : > { %628 = vmatmul.mubr.f32.gmra.mrb[6].mxu1 %v253_v41 }
  0x94   : > { %1036 = vmatpush3.bf16.msra.mxu1 %v1033_v33  ;;  %916 = vmatprep.mubr.msk.f32.mxu1 %vm387_vm3, %v1542_v58 }
  0x95   : > { %974 = vmatpush1.bf16.msra.mxu0 %v973_v42  ;;  %1039 = vmatprep.subr.msk.bf16.mxu1 %vm1516_vm2, %v1037_v43 }
  0x96   : > { %976 = vmatprep.subr.bf16.mxu0 %v975_v45 }
  0x98   : > { %1042 = vmatpush3.bf16.msk.msra.mxu1 %vm1516_vm2, %v1037_v43 }
  0x99   : > { %978 = vmatpush1.bf16.msra.mxu0 %v977_v50 }
  0x9a   : > { %980 = vmatprep.subr.bf16.mxu0 %v979_v51 }
  0x9b   : > { %917 = vmatmul.mubr.msk.f32.vlgmr.msra.gmra.mrb[8].mxu1 %vm387_vm3, %v1579_v44 }
  0x9d   : > { %982 = vmatpush1.bf16.msra.mxu0 %v981_v54 }
  0xa0   : > { %469 = vmatmul.mubr.f32.vlgmr.msra.gmra.mrb[0].mxu0 %v250_v29 }
  0xa1   : > { %474 = vmatprep.mubr.f32.mxu0 %v254_v34 }
  0xa4   : > { %475 = vmatmul.mubr.f32.gmra.mrb[2].mxu0 %v253_v41 }
 0x142   : > { %v547_v58 = vpop.f32.mrb[0].mxu1 }
 0x143   : > { %v549_v55 = vpop.f32.mrb[1].mxu1 }
 0x14d   : > { %v553_v56 = vpop.f32.mrb[2].mxu1 }
 0x14e   : > { %v555_v57 = vpop.f32.mrb[3].mxu1 }
 0x162   : > { %v890_v60 = vpop.f32.mrb[4].mxu1 }
 0x163   : > { %v891_v44 = vpop.f32.mrb[5].mxu1 }
 0x164   : > { %v892_v61 = vadd.f32 %v891_v44, %v890_v60 }
 0x166   : > { %v893_v1 = vpop.f32.mrb[6].mxu1  ;;  %v625_v6 = vadd.f32 %v892_v61, %v383_v4 }
 0x167   : > { %v894_v2 = vpop.f32.mrb[7].mxu1 }
 0x168   : > { %v895_v3 = vadd.f32 %v894_v2, %v893_v1 }
 0x16a   : > { %v630_v5 = vadd.f32 %v895_v3, %v383_v4 }
 0x16e   : > { %v918_v9 = vpop.f32.mrb[8].mxu1 }
 0x16f   : > { %v705_v10 = vadd.f32 %v918_v9, %v630_v5  ;;  %v699_v11 = vpop.f32.mrb[9].mxu1 }
 0x170   : > { %v700_v12 = vadd.f32 %v699_v11, %v625_v6 }
 0x171   : > { %713 = vst [vmem:[%s240_s6 + $0x28] sm:$0xff] %v705_v10 }
 0x172   : > { %710 = vst [vmem:[%s240_s6 + $0x10] sm:$0xff] %v700_v12 }
 0x173   : > { %v470_v15 = vpop.f32.mrb[0].mxu0 }
 0x174   : > { %v471_v16 = vadd.f32 %v470_v15, %v375_v13  ;;  %v472_v17 = vpop.f32.mrb[1].mxu0 }
 0x175   : > { %v473_v18 = vadd.f32 %v472_v17, %v379_v14 }
 0x176   : > { %v548_v0 = vadd.f32 %v547_v58, %v471_v16 }
 0x177   : > { %v550_v19 = vadd.f32 %v549_v55, %v473_v18  ;;  %v476_v20 = vpop.f32.mrb[2].mxu0 }
 0x178   : > { %708 = vst [vmem:[%s240_s6] sm:$0xff] %v548_v0  ;;  %v477_v21 = vadd.f32 %v476_v20, %v375_v13  ;;  %v478_v22 = vpop.f32.mrb[3].mxu0 }
 0x179   : > { %709 = vst [vmem:[%s240_s6 + $0x8] sm:$0xff] %v550_v19  ;;  %v479_v23 = vadd.f32 %v478_v22, %v379_v14 }
 0x17a   : > { %v554_v24 = vadd.f32 %v553_v56, %v477_v21 }
 0x17b   : > { %v556_v25 = vadd.f32 %v555_v57, %v479_v23 }
 0x17c   : > { %711 = vst [vmem:[%s240_s6 + $0x18] sm:$0xff] %v554_v24 }
 0x17d   : > { %712 = vst [vmem:[%s240_s6 + $0x20] sm:$0xff] %v556_v25 }
 0x17e   : > { %1206 = shalt.err (!%p1203_p0)
}
 0x17f   : > { %s1207_s29 = scalar_lea.hbm %s1644_s10, 768  ;;  %s1211_s26 = scalar_lea.hbm %s1696_s3, 1536 }
 0x180   : > { %p1208_p4 = scmp.ne.s32.totalorder %s1644_s10, %s1207_s29  ;;  %p1212_p2 = scmp.lt.u32.totalorder %s1644_s10, %s1696_s3 }
 0x181   : > { %p1213_p9 = scmp.lt.u32.totalorder %s1211_s26, %s1207_s29  ;;  %p1215_p11 = scmp.lt.u32.totalorder %s1207_s29, %s1644_s10 }
 0x182   : > { %p1209_p6 = pnand %p1208_p4, %p1721_p13 }
 0x183   : > { %p1214_p10 = por %p1213_p9, %p1212_p2 }
 0x184   : > { %p1210_p12 = pneg %p1209_p6 }
 0x185   : > { %p1216_p5 = por %p1215_p11, %p1214_p10 }
 0x187   : > { %p1217_p1 = pnand %p1216_p5, %p1210_p12 }
 0x189   : > { %1220 = shalt.err (!%p1217_p1)
}
 0x18a   : > { %s1289_s6 = smov 384   ;;  %s1290_s20 = smov 768  }
 0x18b   : > { %s1291_s8 = smov 24  }
 0x18c   : > { %1060 = dma.vmem_to_hbm [thread:$0]  (%p1721_p13), %s1639_s7, 768, %s1644_s10, %s715_s15, %s1289_s6, %s1290_s20, %s1291_s8  }
 0x18d PF: > { %s746_s28 = sand.u32 1, %s1259_s12   ;;  %p1722_p3 = scmp.ne.s32.totalorder %s1708_s25, 0 }
 0x18e   : > { %p1723_p7 = scmp.ge.s32.totalorder %s1279_s17, 2  ;;  %s747_s22 = scalar_lea.sflag [#allocation4], %s746_s28 }
 0x190   : > { %p1071_p8 = pnand %p1723_p7, %p1722_p3 }
 0x192   : > { %1254 = dma.done.wait (!%p1071_p8), %s747_s22, 768  }
 0x193   : > { %1256 = vsyncadd (!%p1071_p8), %s747_s22, 4294966528  ;;  %s20_s17 = sadd.s32 1, %s1279_s17   ;;  %s1724_s12 = smov %s1263_s13 }
 0x194   : > { %p17_p0 = scmp.ge.s32.totalorder %s20_s17, 4   ;;  %s1725_s13 = smov %s1267_s14 }
 0x195   : > { %s1726_s14 = smov %s1441_s5  ;;  %s1727_s15 = smov %s1275_s16 }
 0x196   : > { %s1728_s16 = smov %s1730_s4  ;;  %19 = sbr.rel (!%p17_p0) target bundleno = 7 (0x7), region = 86 }
 0x19d   :  { %752 = vsyncpa [#allocation3], 1 }
 0x19e   :  { %754 = vsyncpa [#allocation3 + $0x1], 1 }
 0x19f   :  { %755 = vsyncpa [#allocation6], 1 }
 0x1a0   :  { %757 = vsyncpa [#allocation6 + $0x1], 1 }
 0x1a1   :  { %758 = vsyncpa [#allocation4], 1 }
 0x1a2   :  { %760 = vsyncpa [#allocation4 + $0x1], 1 }

</bundles_post_ra>
